<compile_context>
chip_gen: v5e
topology: v5e:2x2
jax: 0.10.0
libtpu: 0.0.40
codegen_flags: <defaults>
</compile_context>

<pallas_src>
import jax
import jax.numpy as jnp
from jax.experimental import pallas as pl
from jax.experimental.pallas import tpu as pltpu


LABEL_PAD = 128          # lane-dense label dimension carried through head + CRF
NEG = -1e9               # "never choose this tag" value for padded CRF parameters


def _round_up(x, m):
    return ((x + m - 1) // m) * m


# ----------------------------------------------------------------------------
# Pallas kernel 1: tiled dense layer  o = act(x @ w + b)
#   grid = (M//tm, N//tn, K//tk); bf16 MXU operands, f32 accumulator in VMEM scratch,
#   bias (+ optional activation) fused into the k==last epilogue.
# ----------------------------------------------------------------------------
def _make_linear_kernel(activation):
    def kernel(x_ref, w_ref, b_ref, o_ref, acc_ref):
        @pl.when(pl.program_id(2) == 0)
        def _():
            acc_ref[...] = jnp.zeros_like(acc_ref)

        acc_ref[...] += jnp.dot(x_ref[...], w_ref[...],
                                preferred_element_type=jnp.float32)

        @pl.when(pl.program_id(2) == pl.num_programs(2) - 1)
        def _():
            r = acc_ref[...] + b_ref[...]
            if activation is not None:
                r = activation(r)
            o_ref[...] = r.astype(o_ref.dtype)
    return kernel


def pallas_linear(x, w, b, activation=None, n_out=None):
    """o = activation(x @ w + b), returned as (M, n_out) f32 (n_out defaults to N).

    Operands are cast to bf16 for the MXU; accumulation is f32.  M/N/K are zero-padded
    up to tile multiples, so requesting n_out > N yields exact-zero extra columns
    (used to hand a lane-dense 128-wide feature slab straight to the CRF).
    """
    M, K = x.shape
    Kw, N = w.shape
    assert K == Kw
    if n_out is None:
        n_out = N

    # Tile choice: lane dims multiples of 128 (up to 256 to feed the 2x256^2 MXU on
    # v6e/v7x), sublane multiples of 8.  Double-buffered tile budget stays well under
    # 24 MiB, so it is safe for v7x's 64 MiB VMEM as well as v5e/v6e.
    tm = min(256, _round_up(M, 8))
    tn = min(256, _round_up(N, 128))
    tk = min(512, _round_up(K, 128))
    Mp, Kp, Np = _round_up(M, tm), _round_up(K, tk), _round_up(N, tn)
    assert n_out <= Np

    xp = jnp.pad(x.astype(jnp.bfloat16), ((0, Mp - M), (0, Kp - K)))
    wp = jnp.pad(w.astype(jnp.bfloat16), ((0, Kp - K), (0, Np - N)))
    bp = jnp.pad(b.reshape(1, N).astype(jnp.float32), ((0, 0), (0, Np - N)))

    grid = (Mp // tm, Np // tn, Kp // tk)
    flops = 2 * Mp * Np * Kp
    bytes_accessed = (Mp * Kp + Kp * Np) * 2 + (Mp * Np + Np) * 4

    out = pl.pallas_call(
        _make_linear_kernel(activation),
        out_shape=jax.ShapeDtypeStruct((Mp, Np), jnp.float32),
        grid_spec=pltpu.PrefetchScalarGridSpec(
            num_scalar_prefetch=0,
            grid=grid,
            in_specs=[
                pl.BlockSpec((tm, tk), lambda i, j, k: (i, k)),
                pl.BlockSpec((tk, tn), lambda i, j, k: (k, j)),
                pl.BlockSpec((1, tn), lambda i, j, k: (0, j)),
            ],
            out_specs=pl.BlockSpec((tm, tn), lambda i, j, k: (i, j)),
            scratch_shapes=[pltpu.VMEM((tm, tn), jnp.float32)],
        ),
        compiler_params=pltpu.CompilerParams(
            dimension_semantics=("parallel", "parallel", "arbitrary"),
            vmem_limit_bytes=32 * 1024 * 1024,
        ),
        cost_estimate=pl.CostEstimate(flops=flops, transcendentals=0,
                                      bytes_accessed=bytes_accessed),
    )(xp, wp, bp)
    return out[:M, :n_out]


# ----------------------------------------------------------------------------
# Pallas kernel 2: CRF negative log-likelihood, batch-tiled.
#   feat: (S, TB, Lp) f32  lane-dense, Lp = 128, padded tag columns are exact zeros
#   mask: (S, TB, 1)  f32 {0,1}
#   oh:   (S, TB, Lp) f32  one-hot gold labels
#   start/end: (1, Lp), trans: (Lp, Lp)   (padded tags filled with NEG = -1e9)
#   out:  (1, 8, 128) per batch tile, broadcast-filled with sum_b(logZ_b - gold_b)
# ----------------------------------------------------------------------------
def _crf_loss_kernel(feat_ref, mask_ref, oh_ref, start_ref, end_ref, trans_ref, out_ref):
    S, TB, Lp = feat_ref.shape
    trans = trans_ref[...]                       # (Lp, Lp)
    start = start_ref[...]                       # (1, Lp)
    end = end_ref[...]                           # (1, Lp)
    # hoisted out of the time loop (JAX does not CSE broadcasts inside the loop);
    # exp of the NEG-padded rows/cols underflows to exactly 0, isolating padded tags.
    exp_trans = jnp.exp(trans)

    feat0 = feat_ref[0]                          # (TB, Lp)
    oh0 = oh_ref[0]                              # (TB, Lp)
    alpha0 = start + feat0                       # log-denominator init
    # log-numerator init (mask[:,0]==1 assumed, exactly like the torch code)
    score0 = jnp.sum(oh0 * alpha0, axis=1, keepdims=True)        # (TB, 1)

    def body(i, carry):
        alpha, score, prev_oh, last_oh = carry
        fi = feat_ref[i]                         # (TB, Lp)
        mi = mask_ref[i]                         # (TB, 1)
        ohi = oh_ref[i]                          # (TB, Lp)

        # ---- forward recursion as an exp-domain MXU matmul ----
        # logsumexp_j(alpha_j + trans_jk) = log( (exp(alpha - m) @ exp(trans))_k ) + m
        m = jnp.max(alpha, axis=1, keepdims=True)
        p = jnp.exp(alpha - m)
        s = jnp.dot(p, exp_trans, preferred_element_type=jnp.float32)
        nxt = jnp.log(jnp.maximum(s, 1e-30)) + m + fi   # maximum() guards padded all-zero columns
        alpha = jnp.where(mi > 0, nxt, alpha)

        # ---- gold path score: trans[y_{i-1}, y_i] + feat[i, y_i]  (one-hot matmul, no gather) ----
        row = jnp.dot(prev_oh, trans, preferred_element_type=jnp.float32)   # (TB, Lp)
        t = jnp.sum(row * ohi, axis=1, keepdims=True)
        e = jnp.sum(fi * ohi, axis=1, keepdims=True)
        score = score + (t + e) * mi

        # last valid tag (equivalent to labels[mask.sum(0)-1] for contiguous prefix masks)
        last_oh = jnp.where(mi > 0, ohi, last_oh)
        return alpha, score, ohi, last_oh

    alpha, score, _, last_oh = jax.lax.fori_loop(1, S, body, (alpha0, score0, oh0, oh0))

    # log-denominator: logsumexp(alpha + end_transitions)
    alpha = alpha + end
    am = jnp.max(alpha, axis=1, keepdims=True)
    logz = jnp.log(jnp.sum(jnp.exp(alpha - am), axis=1, keepdims=True)) + am   # (TB, 1)

    # log-numerator: + end_transitions[last_tag]
    score = score + jnp.sum(last_oh * end, axis=1, keepdims=True)              # (TB, 1)

    tile_sum = jnp.sum(logz - score, keepdims=True)                            # (1, 1)
    out_ref[...] = jnp.broadcast_to(tile_sum.reshape(1, 1, 1), out_ref.shape)


def crf_loss_pallas(features_sblp, mask_sb, labels_sb, start, end, trans, num_labels):
    """mean_b( logZ_b - gold_score_b ); features already lane-padded to Lp labels."""
    S, B, Lp = features_sblp.shape
    L = num_labels

    # padded tags get NEG so they can never win logsumexp; one-hots never select them.
    start_p = jnp.pad(start.reshape(1, L).astype(jnp.float32),
                      ((0, 0), (0, Lp - L)), constant_values=NEG)
    end_p = jnp.pad(end.reshape(1, L).astype(jnp.float32),
                    ((0, 0), (0, Lp - L)), constant_values=NEG)
    trans_p = jnp.pad(trans.astype(jnp.float32),
                      ((0, Lp - L), (0, Lp - L)), constant_values=NEG)

    oh = jax.nn.one_hot(labels_sb, Lp, dtype=jnp.float32)        # (S, B, Lp), lane-dense
    mask3 = mask_sb.astype(jnp.float32).reshape(S, B, 1)

    # batch tiling: a parallel grid axis (shardable across TensorCores on v7x) that also
    # streams (S, tb, Lp) feature slabs instead of holding the full batch resident in VMEM.
    tb = 8 if B % 8 == 0 else B
    nb = B // tb

    per_tile = pl.pallas_call(
        _crf_loss_kernel,
        out_shape=jax.ShapeDtypeStruct((nb, 8, 128), jnp.float32),
        grid_spec=pltpu.PrefetchScalarGridSpec(
            num_scalar_prefetch=0,
            grid=(nb,),
            in_specs=[
                pl.BlockSpec((S, tb, Lp), lambda b: (0, b, 0)),
                pl.BlockSpec((S, tb, 1), lambda b: (0, b, 0)),
                pl.BlockSpec((S, tb, Lp), lambda b: (0, b, 0)),
                pl.BlockSpec((1, Lp), lambda b: (0, 0)),
                pl.BlockSpec((1, Lp), lambda b: (0, 0)),
                pl.BlockSpec((Lp, Lp), lambda b: (0, 0)),
            ],
            out_specs=pl.BlockSpec((1, 8, 128), lambda b: (b, 0, 0)),
        ),
        compiler_params=pltpu.CompilerParams(
            dimension_semantics=("parallel",),
            vmem_limit_bytes=32 * 1024 * 1024,
        ),
    )(features_sblp.astype(jnp.float32), mask3, oh, start_p, end_p, trans_p)
    # torch code returns mean over the batch of (log_denominator - log_numerator)
    return jnp.sum(per_tile[:, 0, 0]) / B


# ----------------------------------------------------------------------------
# Synthetic "BERT" encoder (1 layer).  Dense matmuls go through the Pallas linear kernel;
# embedding lookup / layernorm / attention softmax are glue.
# ----------------------------------------------------------------------------
def layer_norm(x, g, b, eps=1e-12):
    mu = jnp.mean(x, axis=-1, keepdims=True)
    var = jnp.var(x, axis=-1, keepdims=True)
    return (x - mu) / jnp.sqrt(var + eps) * g + b


def tiny_bert(params, input_ids, attention_mask, num_heads):
    B, S = input_ids.shape
    H = params["tok_emb"].shape[1]
    dh = H // num_heads

    x = params["tok_emb"][input_ids] + params["pos_emb"][None, :S, :]
    x = layer_norm(x, params["ln_emb_g"], params["ln_emb_b"])
    x2 = x.reshape(B * S, H)

    # fused Q/K/V projection: a single MXU matmul with N = 3H
    wqkv = jnp.concatenate([params["wq"], params["wk"], params["wv"]], axis=1)
    bqkv = jnp.concatenate([params["bq"], params["bk"], params["bv"]], axis=0)
    qkv = pallas_linear(x2, wqkv, bqkv)                           # (B*S, 3H)
    q, k, v = jnp.split(qkv, 3, axis=1)
    q = q.reshape(B, S, num_heads, dh).transpose(0, 2, 1, 3)
    k = k.reshape(B, S, num_heads, dh).transpose(0, 2, 1, 3)
    v = v.reshape(B, S, num_heads, dh).transpose(0, 2, 1, 3)

    # TODO(synk): at production sequence lengths this score/softmax/context block should be a
    # flash-attention-style Pallas kernel; at demo shapes it stays as XLA glue.
    scores = jnp.einsum("bhqd,bhkd->bhqk", q, k) / jnp.sqrt(jnp.float32(dh))
    bias = (1.0 - attention_mask[:, None, None, :].astype(jnp.float32)) * -1e9
    attn = jax.nn.softmax(scores + bias, axis=-1)
    ctx = jnp.einsum("bhqk,bhkd->bhqd", attn, v).transpose(0, 2, 1, 3).reshape(B * S, H)

    ao = pallas_linear(ctx, params["wo"], params["bo"])
    y = layer_norm(x2 + ao, params["ln1_g"], params["ln1_b"])

    # FFN: bias + GELU fused into the matmul epilogue
    h = pallas_linear(y, params["w1"], params["b1"], activation=jax.nn.gelu)
    o = pallas_linear(h, params["w2"], params["b2"])
    y = layer_norm(y + o, params["ln2_g"], params["ln2_b"])
    return y.reshape(B, S, H)


# ----------------------------------------------------------------------------
# BertCrf.forward equivalent (use_crf=True path)
# ----------------------------------------------------------------------------
def bert_crf_forward(params, input_ids, attention_mask, labels, word_ids, num_heads, num_labels):
    del word_ids  # unused in the torch forward as well
    hidden = tiny_bert(params, input_ids, attention_mask, num_heads)
    # dropout: identity in deterministic eval forward
    B, S, H = hidden.shape
    # hidden2label produced lane-dense (label dim padded to 128, pad columns exact zero);
    # the padding is carried straight into the CRF kernel.
    feats = pallas_linear(hidden.reshape(B * S, H), params["h2l_w"], params["h2l_b"],
                          n_out=LABEL_PAD).reshape(B, S, LABEL_PAD)
    feats_t = jnp.swapaxes(feats, 0, 1)                 # (S, B, Lp) -- torch swapaxes(features, 0, 1)
    mask_t = jnp.swapaxes(attention_mask, 0, 1)         # (S, B)
    labels_t = jnp.swapaxes(labels, 0, 1)               # (S, B)
    return crf_loss_pallas(feats_t, mask_t, labels_t,
                           params["start"], params["end"], params["trans"], num_labels)


# ----------------------------------------------------------------------------
# Pure-JAX reference for the CRF loss (mirrors the torch code) — used as a sanity check.
# ----------------------------------------------------------------------------
def crf_loss_ref(feats, mask, labels, start, end, trans):
    S, B, _ = feats.shape
    maskf = mask.astype(jnp.float32)
    alpha = start[None, :] + feats[0]
    for i in range(1, S):
        x = alpha[:, :, None] + trans[None, :, :] + feats[i][:, None, :]
        nxt = jax.scipy.special.logsumexp(x, axis=1)
        alpha = jnp.where(mask[i][:, None] > 0, nxt, alpha)
    logz = jax.scipy.special.logsumexp(alpha + end[None, :], axis=1)

    br = jnp.arange(B)
    score = start[labels[0]] + feats[0, br, labels[0]]
    for i in range(1, S):
        score = score + (trans[labels[i - 1], labels[i]] + feats[i, br, labels[i]]) * maskf[i]
    seq_lens = mask.sum(axis=0).astype(jnp.int32) - 1
    last_tags = labels[seq_lens, br]
    score = score + end[last_tags]
    return jnp.mean(logz - score)


def init_params(key, vocab, max_seq, hidden, ffn, num_labels):
    ks = jax.random.split(key, 16)
    nrm = lambda k, s: (0.02 * jax.random.normal(k, s)).astype(jnp.float32)
    uni = lambda k, s: jax.random.uniform(k, s, jnp.float32, -0.1, 0.1)
    z = lambda s: jnp.zeros(s, jnp.float32)
    o = lambda s: jnp.ones(s, jnp.float32)
    return {
        "tok_emb": nrm(ks[0], (vocab, hidden)),
        "pos_emb": nrm(ks[1], (max_seq, hidden)),
        "ln_emb_g": o((hidden,)), "ln_emb_b": z((hidden,)),
        "wq": nrm(ks[2], (hidden, hidden)), "bq": z((hidden,)),
        "wk": nrm(ks[3], (hidden, hidden)), "bk": z((hidden,)),
        "wv": nrm(ks[4], (hidden, hidden)), "bv": z((hidden,)),
        "wo": nrm(ks[5], (hidden, hidden)), "bo": z((hidden,)),
        "ln1_g": o((hidden,)), "ln1_b": z((hidden,)),
        "w1": nrm(ks[6], (hidden, ffn)), "b1": z((ffn,)),
        "w2": nrm(ks[7], (ffn, hidden)), "b2": z((hidden,)),
        "ln2_g": o((hidden,)), "ln2_b": z((hidden,)),
        "h2l_w": nrm(ks[8], (hidden, num_labels)), "h2l_b": z((num_labels,)),
        # CRF params: uniform(-0.1, 0.1) as in nn.init.uniform_
        "start": uni(ks[9], (num_labels,)),
        "end": uni(ks[10], (num_labels,)),
        "trans": uni(ks[11], (num_labels, num_labels)),
    }


if __name__ == "__main__":
    B, S, H, FF, V, NH, L = 2, 8, 32, 64, 50, 2, 5

    key = jax.random.PRNGKey(0)
    pkey, k_ids, k_lab = jax.random.split(key, 3)
    params = init_params(pkey, V, S, H, FF, L)

    input_ids = jax.random.randint(k_ids, (B, S), 0, V, dtype=jnp.int32)
    labels = jax.random.randint(k_lab, (B, S), 0, L, dtype=jnp.int32)
    attention_mask = jnp.array([[1] * S, [1] * 5 + [0] * (S - 5)], dtype=jnp.int32)
    word_ids = jnp.tile(jnp.arange(S, dtype=jnp.int32)[None, :], (B, 1))

    loss = bert_crf_forward(params, input_ids, attention_mask, labels, word_ids, NH, L)
    loss = jax.block_until_ready(loss)

    # sanity check 1: Pallas tiled bf16 linear (hidden2label head) vs XLA bf16 reference,
    # and exact-zero padded label columns.
    hidden = tiny_bert(params, input_ids, attention_mask, NH)
    x2 = hidden.reshape(B * S, H)
    feats_ref = (jnp.dot(x2.astype(jnp.bfloat16), params["h2l_w"].astype(jnp.bfloat16),
                         preferred_element_type=jnp.float32) + params["h2l_b"])
    feats_pal = pallas_linear(x2, params["h2l_w"], params["h2l_b"], n_out=LABEL_PAD)
    assert float(jnp.max(jnp.abs(feats_ref - feats_pal[:, :L]))) < 5e-3
    assert float(jnp.max(jnp.abs(feats_pal[:, L:]))) == 0.0

    # sanity check 2: Pallas CRF NLL vs pure-JAX reference on the same features.
    feats_t = jnp.swapaxes(feats_pal.reshape(B, S, LABEL_PAD), 0, 1)
    loss_ref = crf_loss_ref(feats_t[..., :L],
                            jnp.swapaxes(attention_mask, 0, 1),
                            jnp.swapaxes(labels, 0, 1),
                            params["start"], params["end"], params["trans"])
    assert abs(float(loss) - float(loss_ref)) < 1e-3 * max(1.0, abs(float(loss_ref)))

    print("KERNEL_OK")
</pallas_src>

<mosaic_0001>
module attributes {stable_mosaic.version = 11 : i64} {
  func.func @kernel(%arg0: i32, %arg1: i32, %arg2: i32, %arg3: memref<16x128xbf16, #tpu.memory_space<vmem>>, %arg4: memref<128x128xbf16, #tpu.memory_space<vmem>>, %arg5: memref<1x128xf32, #tpu.memory_space<vmem>>, %arg6: memref<16x128xf32, #tpu.memory_space<vmem>>, %arg7: memref<16x128xf32, #tpu.memory_space<vmem>>) attributes {dimension_semantics = [#tpu.dimension_semantics<parallel>, #tpu.dimension_semantics<parallel>, #tpu.dimension_semantics<arbitrary>], iteration_bounds = array<i64: 1, 1, 1>, scalar_prefetch = 0 : i64, scratch_operands = 1 : i64, tpu.core_type = #tpu.core_type<tc>, window_params = [{transform_indices = @transform_0, window_bounds = array<i64: 16, 128>}, {transform_indices = @transform_1, window_bounds = array<i64: 128, 128>}, {transform_indices = @transform_2, window_bounds = array<i64: 1, 128>}, {transform_indices = @transform_3, window_bounds = array<i64: 16, 128>}]} {
    %c0_i32 = arith.constant 0 : i32
    %0 = arith.cmpi eq, %arg2, %c0_i32 : i32
    %1 = arith.extui %0 : i1 to i32
    %c0_i32_0 = arith.constant 0 : i32
    %2 = arith.cmpi ne, %1, %c0_i32_0 : i32
    scf.if %2 {
      %cst_10 = arith.constant 0.000000e+00 : f32
      %12 = vector.broadcast %cst_10 : f32 to vector<16x128xf32>
      %c0_11 = arith.constant 0 : index
      %c0_12 = arith.constant 0 : index
      %13 = vector.load %arg7[%c0_11, %c0_12] : memref<16x128xf32, #tpu.memory_space<vmem>>, vector<16x128xf32>
      tpu.vector_store %arg7[%c0_11, %c0_12], %12 {strides = array<i32>} : memref<16x128xf32, #tpu.memory_space<vmem>>, vector<16x128xf32>,
    } else {
    }
    %c0 = arith.constant 0 : index
    %c0_1 = arith.constant 0 : index
    %3 = vector.load %arg7[%c0, %c0_1] : memref<16x128xf32, #tpu.memory_space<vmem>>, vector<16x128xf32>
    %c0_2 = arith.constant 0 : index
    %c0_3 = arith.constant 0 : index
    %4 = vector.load %arg3[%c0_2, %c0_3] : memref<16x128xbf16, #tpu.memory_space<vmem>>, vector<16x128xbf16>
    %c0_4 = arith.constant 0 : index
    %c0_5 = arith.constant 0 : index
    %5 = vector.load %arg4[%c0_4, %c0_5] : memref<128x128xbf16, #tpu.memory_space<vmem>>, vector<128x128xbf16>
    %cst = arith.constant dense<0.000000e+00> : vector<16x128xf32>
    %6 = tpu.matmul %4, %5, %cst {dimension_numbers = #tpu.dot_dimension_numbers<[1], [0], [0], [1], [0, 0, 1, 1], [], []>} : vector<16x128xbf16>, vector<128x128xbf16>, vector<16x128xf32> -> vector<16x128xf32>
    %7 = arith.addf %3, %6 : vector<16x128xf32>
    %c0_6 = arith.constant 0 : index
    %c0_7 = arith.constant 0 : index
    %8 = vector.load %arg7[%c0_6, %c0_7] : memref<16x128xf32, #tpu.memory_space<vmem>>, vector<16x128xf32>
    tpu.vector_store %arg7[%c0_6, %c0_7], %7 {strides = array<i32>} : memref<16x128xf32, #tpu.memory_space<vmem>>, vector<16x128xf32>,
    %c0_i32_8 = arith.constant 0 : i32
    %9 = arith.cmpi eq, %arg2, %c0_i32_8 : i32
    %10 = arith.extui %9 : i1 to i32
    %c0_i32_9 = arith.constant 0 : i32
    %11 = arith.cmpi ne, %10, %c0_i32_9 : i32
    scf.if %11 {
      %c0_10 = arith.constant 0 : index
      %c0_11 = arith.constant 0 : index
      %12 = vector.load %arg7[%c0_10, %c0_11] : memref<16x128xf32, #tpu.memory_space<vmem>>, vector<16x128xf32>
      %c0_12 = arith.constant 0 : index
      %c0_13 = arith.constant 0 : index
      %13 = vector.load %arg5[%c0_12, %c0_13] : memref<1x128xf32, #tpu.memory_space<vmem>>, vector<1x128xf32>
      %14 = vector.broadcast %13 : vector<1x128xf32> to vector<16x128xf32>
      %15 = arith.addf %12, %14 : vector<16x128xf32>
      %c0_14 = arith.constant 0 : index
      %c0_15 = arith.constant 0 : index
      %16 = vector.load %arg6[%c0_14, %c0_15] : memref<16x128xf32, #tpu.memory_space<vmem>>, vector<16x128xf32>
      tpu.vector_store %arg6[%c0_14, %c0_15], %15 {strides = array<i32>} : memref<16x128xf32, #tpu.memory_space<vmem>>, vector<16x128xf32>,
    } else {
    }
    return
  }
  func.func @transform_0(%arg0: i32, %arg1: i32, %arg2: i32) -> (i32, i32) {
    %c0_i32 = arith.constant 0 : i32
    return %arg0, %arg2 : i32, i32
  }
  func.func @transform_1(%arg0: i32, %arg1: i32, %arg2: i32) -> (i32, i32) {
    %c0_i32 = arith.constant 0 : i32
    return %arg2, %arg1 : i32, i32
  }
  func.func @transform_2(%arg0: i32, %arg1: i32, %arg2: i32) -> (i32, i32) {
    %c0_i32 = arith.constant 0 : i32
    %c0_i32_0 = arith.constant 0 : i32
    return %c0_i32, %arg1 : i32, i32
  }
  func.func @transform_3(%arg0: i32, %arg1: i32, %arg2: i32) -> (i32, i32) {
    %c0_i32 = arith.constant 0 : i32
    return %arg0, %arg1 : i32, i32
  }
}

</mosaic_0001>

<bundles_post_ra>
// kernel: tpu_custom_call.1
= control target key start
LH: loop header
LB: loop body
LE: loop exit
PB: predicated region body
PF: predicated region fallthrough
CT: control target
= control target key end

     0   :  { %8 = vsyncpa [#allocation4], 0  ;;  %s348_s0 = inlined_call_operand.hbm [shape: bf16[16,128], index: 0, kind: input, shape index: {}]   ;;  %s349_s1 = inlined_call_operand.hbm [shape: bf16[128,128], index: 1, kind: input, shape index: {}]   ;;  %s350_s2 = inlined_call_operand.vmem [shape: f32[1,128], index: 2, kind: input, shape index: {}]   ;;  %s351_s3 = inlined_call_operand.hbm [shape: f32[16,128], index: 3, kind: output, shape index: {}]  }
   0x1   :  { %9 = vsyncpa [#allocation7], 0 }
   0x2   :  { %10 = vsyncpa [#allocation5], 0  ;;  %s15_s14 = sshll.u32 %s348_s0, 4  ;;  %s309_s15 = smov [#allocation3]   ;;  %s16_s14 = int_to_ptr.hbm [resolvable:$true] %s15_s14 }
   0x3   :  { %s17_s16 = sshll.u32 %s309_s15, 4  ;;  %s28_s19 = sshll.u32 %s349_s1, 4  ;;  %s18_s16 = int_to_ptr.vmem [resolvable:$true] %s17_s16  ;;  %s29_s19 = int_to_ptr.hbm [resolvable:$true] %s28_s19 }
   0x4   :  { %s310_s20 = smov 64   ;;  %s311_s21 = smov 4  }
   0x5   :  { %23 = dma.hbm_to_vmem [thread:$0]  %s16_s14, 128, %s18_s16, [#allocation4], %s310_s20, %s310_s20, %s311_s21  }
   0x6   :  { %s312_s22 = smov [#allocation6]  }
   0x7   :  { %s30_s23 = sshll.u32 %s312_s22, 4  ;;  %s31_s23 = int_to_ptr.vmem [resolvable:$true] %s30_s23 }
   0x8   :  { %36 = dma.hbm_to_vmem [thread:$0]  %s29_s19, 1024, %s31_s23, [#allocation7], %s310_s20, %s310_s20, %s311_s21  }
   0x9   :  { %303 = dma.done.wait [#allocation4], 128  }
   0xa   :  { %304 = vsyncadd [#allocation4], 4294967168 }
   0xb   :  { %305 = dma.done.wait [#allocation7], 1024  }
   0xc   :  { %306 = vsyncadd [#allocation7], 4294966272  ;;  %v222_v0 = vld [vmem:[#allocation6 + $0x38] sm:$0xff]  ;;  %v221_v1 = vld [vmem:[#allocation6 + $0x30] sm:$0xff]  ;;  %s313_s24 = smov [#allocation8]   ;;  %s164_s28 = sshll.u32 %s351_s3, 4  ;;  %s165_s28 = int_to_ptr.hbm [resolvable:$true] %s164_s28 }
   0xd   :  { %127 = vmatpush.bf16.msra.mxu0 %v222_v0  ;;  %v220_v2 = vld [vmem:[#allocation6 + $0x28] sm:$0xff]  ;;  %v219_v3 = vld [vmem:[#allocation6 + $0x20] sm:$0xff]  ;;  %v218_v4 = vld [vmem:[#allocation6 + $0x18] sm:$0xff]  ;;  %s162_s25 = sshll.u32 %s313_s24, 4  ;;  %s314_s29 = smov 128   ;;  %s163_s25 = int_to_ptr.vmem [resolvable:$true] %s162_s25 }
   0xe   :  { %v217_v5 = vld [vmem:[#allocation6 + $0x10] sm:$0xff]  ;;  %v216_v6 = vld [vmem:[#allocation6 + $0x8] sm:$0xff]  ;;  %v215_v7 = vld [vmem:[#allocation6] sm:$0xff]  ;;  %s315_s30 = smov 8  }
   0xf   :  { %v214_v8 = vld [vmem:[#allocation3] sm:$0xff] }
  0x10   :  { %v230_v9 = vld [vmem:[%s350_s2] ss:$0 sm:$0xff] }
  0x11   :  { %128 = vmatpush.bf16.msra.mxu0 %v221_v1 }
  0x15   :  { %129 = vmatpush.bf16.msra.mxu0 %v220_v2 }
  0x19   :  { %130 = vmatpush.bf16.msra.mxu0 %v219_v3 }
  0x1d   :  { %131 = vmatpush.bf16.msra.mxu0 %v218_v4 }
  0x21   :  { %132 = vmatpush.bf16.msra.mxu0 %v217_v5 }
  0x25   :  { %133 = vmatpush.bf16.msra.mxu0 %v216_v6 }
  0x29   :  { %134 = vmatpush.bf16.msra.mxu0 %v215_v7 }
  0x2c   :  { %135 = vmatmul.bf16.vlgmr.msra.gmra.mxu0 %v214_v8 }
  0xa9   :  { %v136_v10 = vpop.f32.mrf.mxu0 }
  0xaa   :  { %v154_v11 = vadd.f32 %v230_v9, %v136_v10 }
  0xac   :  { %156 = vst [vmem:[#allocation8] sm:$0xff] %v154_v11 }
  0xb1   :  { %v138_v12 = vpop.f32.mrf.mxu0 }
  0xb2   :  { %v155_v13 = vadd.f32 %v230_v9, %v138_v12 }
  0xb4   :  { %157 = vst [vmem:[#allocation8 + $0x8] sm:$0xff] %v155_v13 }
  0xb5   :  { %170 = dma.vmem_to_hbm [thread:$0]  %s163_s25, 256, %s165_s28, [#allocation5], %s314_s29, %s314_s29, %s315_s30  }
  0xb6   :  { %307 = dma.done.wait [#allocation5], 256  }
  0xb7   :  { %308 = vsyncadd [#allocation5], 4294967040 }
  0xb8   :  { %175 = vsyncpa [#allocation4], 1 }
  0xb9   :  { %176 = vsyncpa [#allocation7], 1 }
  0xba   :  { %177 = vsyncpa [#allocation5], 1 }

</bundles_post_ra>
